<compile_context>
chip_gen: v6e
topology: v6e:2x2x1
jax: 0.10.0
libtpu: 0.0.40
codegen_flags: <defaults>
</compile_context>

<pallas_src>
import jax
import jax.numpy as jnp
from jax.experimental import pallas as pl
from jax.experimental.pallas import tpu as pltpu

EPS = 1e-5           # nn.BatchNorm2d default eps
NEG_SLOPE = 0.2      # nn.LeakyReLU(0.2)
_VMEM_LIMIT = 32 * 1024 * 1024   # safe on v5e/v6e (128 MiB) and v7x (64 MiB)


def _conv_pool_stats_kernel(x_ref, w_ref, pooled_ref, sum_ref, ssq_ref):
    """x_ref: (4*Cin, TM)   w_ref: (Cout, Cin)
    pooled_ref: (Cout, TM)  sum_ref/ssq_ref: (Cout, 1), accumulated over M."""
    cout, cin = w_ref.shape

    def conv_slot(s):
        base = s * cin
        if cin <= 16:
            # Tiny contraction: VPU broadcast multiply-adds in the lane-dense
            # (Cout, TM) layout (MXU would be nearly idle at K=Cin).
            acc = w_ref[:, 0:1] * x_ref[base:base + 1, :]
            for c in range(1, cin):
                acc = acc + w_ref[:, c:c + 1] * x_ref[base + c:base + c + 1, :]
            return acc
        # Larger channel counts: one MXU matmul per window slot.
        return jnp.dot(w_ref[...], x_ref[base:base + cin, :],
                       preferred_element_type=jnp.float32)

    # 1x1 conv per 2x2-window slot, then MaxPool2d(2,2) == 4-way elementwise max.
    pooled = jnp.maximum(jnp.maximum(conv_slot(0), conv_slot(1)),
                         jnp.maximum(conv_slot(2), conv_slot(3)))
    pooled_ref[...] = pooled

    # BatchNorm batch statistics: per-channel sum / sum-of-squares accumulated
    # across the M grid axis (same output block each step -> VMEM-resident).
    @pl.when(pl.program_id(0) == 0)
    def _():
        sum_ref[...] = jnp.zeros_like(sum_ref)
        ssq_ref[...] = jnp.zeros_like(ssq_ref)

    sum_ref[...] += jnp.sum(pooled, axis=1, keepdims=True)
    ssq_ref[...] += jnp.sum(pooled * pooled, axis=1, keepdims=True)


def _bn_lrelu_kernel(pooled_ref, scale_ref, shift_ref, o_ref):
    """pooled_ref/o_ref: (Cout, TM); scale_ref/shift_ref: (Cout, 1)."""
    z = pooled_ref[...] * scale_ref[...] + shift_ref[...]
    o_ref[...] = jnp.maximum(z, NEG_SLOPE * z)   # LeakyReLU(0.2)


def _pick_tile(m):
    # ~512-pixel tiles give ~85% of HBM roofline; the tile must divide M and
    # keep the lane (last) dim a multiple of 128 unless one block covers M.
    for tm in (512, 256, 128):
        if m % tm == 0:
            return tm
    return m


def basic_block_au(x_nchw, weight, bias, gamma, beta):
    """Forward matching BasicBlock_AU (kernel_size=(1,1), stride=(1,1),
    maxpool=(2,2), padding=0).  Input/output are NCHW.  `bias` is accepted for
    API parity but unused: it cancels exactly through train-mode BatchNorm."""
    del bias
    N, Cin, H, W = x_nchw.shape
    Cout = weight.shape[0]
    Hp, Wp = H // 2, W // 2              # MaxPool2d(2,2) floors odd extents
    M = N * Hp * Wp
    TM = _pick_tile(M)
    n_tiles = M // TM

    # Single fused repack NCHW -> (4*Cin, M): rows = (window slot, in-channel)
    # on the sublane axis, columns = pooled pixels (n, hp, wp) on the lane axis.
    x = x_nchw[:, :, :2 * Hp, :2 * Wp].astype(jnp.float32)
    x_win = x.reshape(N, Cin, Hp, 2, Wp, 2)
    x_packed = jnp.transpose(x_win, (3, 5, 1, 0, 2, 4)).reshape(4 * Cin, M)
    # TODO(synk): for very large inputs this repack is an extra HBM round trip;
    # it could be folded into the kernel with strided in-kernel window reads.

    w2 = weight.reshape(Cout, Cin).astype(jnp.float32)

    # Pass 1: conv + maxpool + per-channel sum / sum-of-squares.
    pooled, csum, cssq = pl.pallas_call(
        _conv_pool_stats_kernel,
        out_shape=(
            jax.ShapeDtypeStruct((Cout, M), jnp.float32),
            jax.ShapeDtypeStruct((Cout, 1), jnp.float32),
            jax.ShapeDtypeStruct((Cout, 1), jnp.float32),
        ),
        grid=(n_tiles,),
        in_specs=[
            pl.BlockSpec((4 * Cin, TM), lambda i: (0, i)),
            pl.BlockSpec((Cout, Cin), lambda i: (0, 0)),
        ],
        out_specs=(
            pl.BlockSpec((Cout, TM), lambda i: (0, i)),
            pl.BlockSpec((Cout, 1), lambda i: (0, 0)),
            pl.BlockSpec((Cout, 1), lambda i: (0, 0)),
        ),
        compiler_params=pltpu.CompilerParams(
            dimension_semantics=("arbitrary",),   # stats accumulate across M
            vmem_limit_bytes=_VMEM_LIMIT),
    )(x_packed, w2)

    # Fold batch statistics into per-channel scale/shift (tiny, plain JAX).
    inv_m = 1.0 / M
    mean = csum * inv_m                                    # (Cout, 1)
    var = jnp.maximum(cssq * inv_m - mean * mean, 0.0)     # biased variance
    scale = gamma.reshape(Cout, 1).astype(jnp.float32) * jax.lax.rsqrt(var + EPS)
    shift = beta.reshape(Cout, 1).astype(jnp.float32) - mean * scale

    # Pass 2: normalize + LeakyReLU, fully elementwise.
    out2d = pl.pallas_call(
        _bn_lrelu_kernel,
        out_shape=jax.ShapeDtypeStruct((Cout, M), jnp.float32),
        grid=(n_tiles,),
        in_specs=[
            pl.BlockSpec((Cout, TM), lambda i: (0, i)),
            pl.BlockSpec((Cout, 1), lambda i: (0, 0)),
            pl.BlockSpec((Cout, 1), lambda i: (0, 0)),
        ],
        out_specs=pl.BlockSpec((Cout, TM), lambda i: (0, i)),
        compiler_params=pltpu.CompilerParams(
            dimension_semantics=("parallel",),    # megacore-friendly on v7x
            vmem_limit_bytes=_VMEM_LIMIT),
    )(pooled, scale, shift)

    # (Cout, M) -> (N, Cout, Hp, Wp)
    return jnp.transpose(out2d.reshape(Cout, N, Hp, Wp), (1, 0, 2, 3))


def _reference(x, weight, bias, gamma, beta):
    """Pure-JAX reference of the PyTorch forward (NCHW), including conv bias."""
    N, Cin, H, W = x.shape
    Cout = weight.shape[0]
    Hp, Wp = H // 2, W // 2
    x = x[:, :, :2 * Hp, :2 * Wp]
    conv = jnp.einsum("nchw,oc->nohw", x, weight.reshape(Cout, Cin))
    conv = conv + bias[None, :, None, None]
    pooled = conv.reshape(N, Cout, Hp, 2, Wp, 2).max(axis=(3, 5))
    mean = pooled.mean(axis=(0, 2, 3), keepdims=True)
    var = ((pooled - mean) ** 2).mean(axis=(0, 2, 3), keepdims=True)
    z = (pooled - mean) / jnp.sqrt(var + EPS)
    z = z * gamma[None, :, None, None] + beta[None, :, None, None]
    return jnp.where(z >= 0, z, NEG_SLOPE * z)


if __name__ == "__main__":
    key = jax.random.PRNGKey(0)
    k_x, k_w, k_b, k_g, k_be, k_x2 = jax.random.split(key, 6)

    N, Cin, Cout, H, W = 2, 4, 8, 16, 16

    x = jax.random.normal(k_x, (N, Cin, H, W), dtype=jnp.float32)
    # Conv2d(4, 8, kernel_size=(1,1)) params (deterministic).
    weight = 0.3 * jax.random.normal(k_w, (Cout, Cin, 1, 1), dtype=jnp.float32)
    bias = 0.1 * jax.random.normal(k_b, (Cout,), dtype=jnp.float32)
    # BatchNorm2d(8) affine params (deterministic, non-trivial).
    gamma = 1.0 + 0.1 * jax.random.normal(k_g, (Cout,), dtype=jnp.float32)
    beta = 0.05 * jax.random.normal(k_be, (Cout,), dtype=jnp.float32)

    out = jax.block_until_ready(basic_block_au(x, weight, bias, gamma, beta))
    ref = _reference(x, weight, bias, gamma, beta)
    assert out.shape == (N, Cout, H // 2, W // 2), out.shape
    assert jnp.allclose(out, ref, atol=1e-4, rtol=1e-4), \
        float(jnp.max(jnp.abs(out - ref)))

    # Larger spatial extent exercises the multi-tile path
    # (M = 2*32*32 = 2048 -> 4 grid steps of 512 with cross-tile stat accumulation).
    x2 = jax.random.normal(k_x2, (N, Cin, 64, 64), dtype=jnp.float32)
    out2 = jax.block_until_ready(basic_block_au(x2, weight, bias, gamma, beta))
    ref2 = _reference(x2, weight, bias, gamma, beta)
    assert jnp.allclose(out2, ref2, atol=1e-4, rtol=1e-4), \
        float(jnp.max(jnp.abs(out2 - ref2)))

    print("KERNEL_OK")
</pallas_src>

<mosaic_0001>
module attributes {stable_mosaic.version = 11 : i64} {
  func.func @_conv_pool_stats_kernel(%arg0: i32, %arg1: memref<16x128xf32, #tpu.memory_space<vmem>>, %arg2: memref<8x4xf32, #tpu.memory_space<vmem>>, %arg3: memref<8x128xf32, #tpu.memory_space<vmem>>, %arg4: memref<8x1xf32, #tpu.memory_space<vmem>>, %arg5: memref<8x1xf32, #tpu.memory_space<vmem>>) attributes {dimension_semantics = [#tpu.dimension_semantics<arbitrary>], iteration_bounds = array<i64: 1>, scalar_prefetch = 0 : i64, scratch_operands = 0 : i64, tpu.core_type = #tpu.core_type<tc>, window_params = [{transform_indices = @transform_0, window_bounds = array<i64: 16, 128>}, {pipeline_mode = #tpu.pipeline_mode<synchronous>, transform_indices = @transform_1, window_bounds = array<i64: 8, 4>}, {transform_indices = @transform_2, window_bounds = array<i64: 8, 128>}, {pipeline_mode = #tpu.pipeline_mode<synchronous>, transform_indices = @transform_3, window_bounds = array<i64: 8, 1>}, {pipeline_mode = #tpu.pipeline_mode<synchronous>, transform_indices = @transform_4, window_bounds = array<i64: 8, 1>}]} {
    %c0 = arith.constant 0 : index
    %c0_0 = arith.constant 0 : index
    %0 = vector.load %arg2[%c0, %c0_0] : memref<8x4xf32, #tpu.memory_space<vmem>>, vector<8x1xf32>
    %c0_1 = arith.constant 0 : index
    %c0_2 = arith.constant 0 : index
    %1 = vector.load %arg1[%c0_1, %c0_2] : memref<16x128xf32, #tpu.memory_space<vmem>>, vector<1x128xf32>
    %2 = vector.broadcast %0 : vector<8x1xf32> to vector<8x128xf32>
    %3 = vector.broadcast %1 : vector<1x128xf32> to vector<8x128xf32>
    %4 = arith.mulf %2, %3 : vector<8x128xf32>
    %c0_3 = arith.constant 0 : index
    %c1 = arith.constant 1 : index
    %5 = vector.load %arg2[%c0_3, %c1] : memref<8x4xf32, #tpu.memory_space<vmem>>, vector<8x1xf32>
    %c1_4 = arith.constant 1 : index
    %c0_5 = arith.constant 0 : index
    %6 = vector.load %arg1[%c1_4, %c0_5] : memref<16x128xf32, #tpu.memory_space<vmem>>, vector<1x128xf32>
    %7 = vector.broadcast %5 : vector<8x1xf32> to vector<8x128xf32>
    %8 = vector.broadcast %6 : vector<1x128xf32> to vector<8x128xf32>
    %9 = arith.mulf %7, %8 : vector<8x128xf32>
    %10 = arith.addf %4, %9 : vector<8x128xf32>
    %c0_6 = arith.constant 0 : index
    %c2 = arith.constant 2 : index
    %11 = vector.load %arg2[%c0_6, %c2] : memref<8x4xf32, #tpu.memory_space<vmem>>, vector<8x1xf32>
    %c2_7 = arith.constant 2 : index
    %c0_8 = arith.constant 0 : index
    %12 = vector.load %arg1[%c2_7, %c0_8] : memref<16x128xf32, #tpu.memory_space<vmem>>, vector<1x128xf32>
    %13 = vector.broadcast %11 : vector<8x1xf32> to vector<8x128xf32>
    %14 = vector.broadcast %12 : vector<1x128xf32> to vector<8x128xf32>
    %15 = arith.mulf %13, %14 : vector<8x128xf32>
    %16 = arith.addf %10, %15 : vector<8x128xf32>
    %c0_9 = arith.constant 0 : index
    %c3 = arith.constant 3 : index
    %17 = vector.load %arg2[%c0_9, %c3] : memref<8x4xf32, #tpu.memory_space<vmem>>, vector<8x1xf32>
    %c3_10 = arith.constant 3 : index
    %c0_11 = arith.constant 0 : index
    %18 = vector.load %arg1[%c3_10, %c0_11] : memref<16x128xf32, #tpu.memory_space<vmem>>, vector<1x128xf32>
    %19 = vector.broadcast %17 : vector<8x1xf32> to vector<8x128xf32>
    %20 = vector.broadcast %18 : vector<1x128xf32> to vector<8x128xf32>
    %21 = arith.mulf %19, %20 : vector<8x128xf32>
    %22 = arith.addf %16, %21 : vector<8x128xf32>
    %c0_12 = arith.constant 0 : index
    %c0_13 = arith.constant 0 : index
    %23 = vector.load %arg2[%c0_12, %c0_13] : memref<8x4xf32, #tpu.memory_space<vmem>>, vector<8x1xf32>
    %c4 = arith.constant 4 : index
    %c0_14 = arith.constant 0 : index
    %24 = vector.load %arg1[%c4, %c0_14] : memref<16x128xf32, #tpu.memory_space<vmem>>, vector<1x128xf32>
    %25 = vector.broadcast %23 : vector<8x1xf32> to vector<8x128xf32>
    %26 = vector.broadcast %24 : vector<1x128xf32> to vector<8x128xf32>
    %27 = arith.mulf %25, %26 : vector<8x128xf32>
    %c0_15 = arith.constant 0 : index
    %c1_16 = arith.constant 1 : index
    %28 = vector.load %arg2[%c0_15, %c1_16] : memref<8x4xf32, #tpu.memory_space<vmem>>, vector<8x1xf32>
    %c5 = arith.constant 5 : index
    %c0_17 = arith.constant 0 : index
    %29 = vector.load %arg1[%c5, %c0_17] : memref<16x128xf32, #tpu.memory_space<vmem>>, vector<1x128xf32>
    %30 = vector.broadcast %28 : vector<8x1xf32> to vector<8x128xf32>
    %31 = vector.broadcast %29 : vector<1x128xf32> to vector<8x128xf32>
    %32 = arith.mulf %30, %31 : vector<8x128xf32>
    %33 = arith.addf %27, %32 : vector<8x128xf32>
    %c0_18 = arith.constant 0 : index
    %c2_19 = arith.constant 2 : index
    %34 = vector.load %arg2[%c0_18, %c2_19] : memref<8x4xf32, #tpu.memory_space<vmem>>, vector<8x1xf32>
    %c6 = arith.constant 6 : index
    %c0_20 = arith.constant 0 : index
    %35 = vector.load %arg1[%c6, %c0_20] : memref<16x128xf32, #tpu.memory_space<vmem>>, vector<1x128xf32>
    %36 = vector.broadcast %34 : vector<8x1xf32> to vector<8x128xf32>
    %37 = vector.broadcast %35 : vector<1x128xf32> to vector<8x128xf32>
    %38 = arith.mulf %36, %37 : vector<8x128xf32>
    %39 = arith.addf %33, %38 : vector<8x128xf32>
    %c0_21 = arith.constant 0 : index
    %c3_22 = arith.constant 3 : index
    %40 = vector.load %arg2[%c0_21, %c3_22] : memref<8x4xf32, #tpu.memory_space<vmem>>, vector<8x1xf32>
    %c7 = arith.constant 7 : index
    %c0_23 = arith.constant 0 : index
    %41 = vector.load %arg1[%c7, %c0_23] : memref<16x128xf32, #tpu.memory_space<vmem>>, vector<1x128xf32>
    %42 = vector.broadcast %40 : vector<8x1xf32> to vector<8x128xf32>
    %43 = vector.broadcast %41 : vector<1x128xf32> to vector<8x128xf32>
    %44 = arith.mulf %42, %43 : vector<8x128xf32>
    %45 = arith.addf %39, %44 : vector<8x128xf32>
    %46 = arith.maximumf %22, %45 : vector<8x128xf32>
    %c0_24 = arith.constant 0 : index
    %c0_25 = arith.constant 0 : index
    %47 = vector.load %arg2[%c0_24, %c0_25] : memref<8x4xf32, #tpu.memory_space<vmem>>, vector<8x1xf32>
    %c8 = arith.constant 8 : index
    %c0_26 = arith.constant 0 : index
    %48 = vector.load %arg1[%c8, %c0_26] : memref<16x128xf32, #tpu.memory_space<vmem>>, vector<1x128xf32>
    %49 = vector.broadcast %47 : vector<8x1xf32> to vector<8x128xf32>
    %50 = vector.broadcast %48 : vector<1x128xf32> to vector<8x128xf32>
    %51 = arith.mulf %49, %50 : vector<8x128xf32>
    %c0_27 = arith.constant 0 : index
    %c1_28 = arith.constant 1 : index
    %52 = vector.load %arg2[%c0_27, %c1_28] : memref<8x4xf32, #tpu.memory_space<vmem>>, vector<8x1xf32>
    %c9 = arith.constant 9 : index
    %c0_29 = arith.constant 0 : index
    %53 = vector.load %arg1[%c9, %c0_29] : memref<16x128xf32, #tpu.memory_space<vmem>>, vector<1x128xf32>
    %54 = vector.broadcast %52 : vector<8x1xf32> to vector<8x128xf32>
    %55 = vector.broadcast %53 : vector<1x128xf32> to vector<8x128xf32>
    %56 = arith.mulf %54, %55 : vector<8x128xf32>
    %57 = arith.addf %51, %56 : vector<8x128xf32>
    %c0_30 = arith.constant 0 : index
    %c2_31 = arith.constant 2 : index
    %58 = vector.load %arg2[%c0_30, %c2_31] : memref<8x4xf32, #tpu.memory_space<vmem>>, vector<8x1xf32>
    %c10 = arith.constant 10 : index
    %c0_32 = arith.constant 0 : index
    %59 = vector.load %arg1[%c10, %c0_32] : memref<16x128xf32, #tpu.memory_space<vmem>>, vector<1x128xf32>
    %60 = vector.broadcast %58 : vector<8x1xf32> to vector<8x128xf32>
    %61 = vector.broadcast %59 : vector<1x128xf32> to vector<8x128xf32>
    %62 = arith.mulf %60, %61 : vector<8x128xf32>
    %63 = arith.addf %57, %62 : vector<8x128xf32>
    %c0_33 = arith.constant 0 : index
    %c3_34 = arith.constant 3 : index
    %64 = vector.load %arg2[%c0_33, %c3_34] : memref<8x4xf32, #tpu.memory_space<vmem>>, vector<8x1xf32>
    %c11 = arith.constant 11 : index
    %c0_35 = arith.constant 0 : index
    %65 = vector.load %arg1[%c11, %c0_35] : memref<16x128xf32, #tpu.memory_space<vmem>>, vector<1x128xf32>
    %66 = vector.broadcast %64 : vector<8x1xf32> to vector<8x128xf32>
    %67 = vector.broadcast %65 : vector<1x128xf32> to vector<8x128xf32>
    %68 = arith.mulf %66, %67 : vector<8x128xf32>
    %69 = arith.addf %63, %68 : vector<8x128xf32>
    %c0_36 = arith.constant 0 : index
    %c0_37 = arith.constant 0 : index
    %70 = vector.load %arg2[%c0_36, %c0_37] : memref<8x4xf32, #tpu.memory_space<vmem>>, vector<8x1xf32>
    %c12 = arith.constant 12 : index
    %c0_38 = arith.constant 0 : index
    %71 = vector.load %arg1[%c12, %c0_38] : memref<16x128xf32, #tpu.memory_space<vmem>>, vector<1x128xf32>
    %72 = vector.broadcast %70 : vector<8x1xf32> to vector<8x128xf32>
    %73 = vector.broadcast %71 : vector<1x128xf32> to vector<8x128xf32>
    %74 = arith.mulf %72, %73 : vector<8x128xf32>
    %c0_39 = arith.constant 0 : index
    %c1_40 = arith.constant 1 : index
    %75 = vector.load %arg2[%c0_39, %c1_40] : memref<8x4xf32, #tpu.memory_space<vmem>>, vector<8x1xf32>
    %c13 = arith.constant 13 : index
    %c0_41 = arith.constant 0 : index
    %76 = vector.load %arg1[%c13, %c0_41] : memref<16x128xf32, #tpu.memory_space<vmem>>, vector<1x128xf32>
    %77 = vector.broadcast %75 : vector<8x1xf32> to vector<8x128xf32>
    %78 = vector.broadcast %76 : vector<1x128xf32> to vector<8x128xf32>
    %79 = arith.mulf %77, %78 : vector<8x128xf32>
    %80 = arith.addf %74, %79 : vector<8x128xf32>
    %c0_42 = arith.constant 0 : index
    %c2_43 = arith.constant 2 : index
    %81 = vector.load %arg2[%c0_42, %c2_43] : memref<8x4xf32, #tpu.memory_space<vmem>>, vector<8x1xf32>
    %c14 = arith.constant 14 : index
    %c0_44 = arith.constant 0 : index
    %82 = vector.load %arg1[%c14, %c0_44] : memref<16x128xf32, #tpu.memory_space<vmem>>, vector<1x128xf32>
    %83 = vector.broadcast %81 : vector<8x1xf32> to vector<8x128xf32>
    %84 = vector.broadcast %82 : vector<1x128xf32> to vector<8x128xf32>
    %85 = arith.mulf %83, %84 : vector<8x128xf32>
    %86 = arith.addf %80, %85 : vector<8x128xf32>
    %c0_45 = arith.constant 0 : index
    %c3_46 = arith.constant 3 : index
    %87 = vector.load %arg2[%c0_45, %c3_46] : memref<8x4xf32, #tpu.memory_space<vmem>>, vector<8x1xf32>
    %c15 = arith.constant 15 : index
    %c0_47 = arith.constant 0 : index
    %88 = vector.load %arg1[%c15, %c0_47] : memref<16x128xf32, #tpu.memory_space<vmem>>, vector<1x128xf32>
    %89 = vector.broadcast %87 : vector<8x1xf32> to vector<8x128xf32>
    %90 = vector.broadcast %88 : vector<1x128xf32> to vector<8x128xf32>
    %91 = arith.mulf %89, %90 : vector<8x128xf32>
    %92 = arith.addf %86, %91 : vector<8x128xf32>
    %93 = arith.maximumf %69, %92 : vector<8x128xf32>
    %94 = arith.maximumf %46, %93 : vector<8x128xf32>
    %c0_48 = arith.constant 0 : index
    %c0_49 = arith.constant 0 : index
    %95 = vector.load %arg3[%c0_48, %c0_49] : memref<8x128xf32, #tpu.memory_space<vmem>>, vector<8x128xf32>
    tpu.vector_store %arg3[%c0_48, %c0_49], %94 {strides = array<i32>} : memref<8x128xf32, #tpu.memory_space<vmem>>, vector<8x128xf32>,
    %c0_i32 = arith.constant 0 : i32
    %96 = arith.cmpi eq, %arg0, %c0_i32 : i32
    %97 = arith.extui %96 : i1 to i32
    %c0_i32_50 = arith.constant 0 : i32
    %98 = arith.cmpi ne, %97, %c0_i32_50 : i32
    scf.if %98 {
      %cst_60 = arith.constant 0.000000e+00 : f32
      %110 = vector.broadcast %cst_60 : f32 to vector<8x1xf32>
      %c0_61 = arith.constant 0 : index
      %c0_62 = arith.constant 0 : index
      %111 = vector.load %arg4[%c0_61, %c0_62] : memref<8x1xf32, #tpu.memory_space<vmem>>, vector<8x1xf32>
      tpu.vector_store %arg4[%c0_61, %c0_62], %110 {strides = array<i32>} : memref<8x1xf32, #tpu.memory_space<vmem>>, vector<8x1xf32>,
      %cst_63 = arith.constant 0.000000e+00 : f32
      %112 = vector.broadcast %cst_63 : f32 to vector<8x1xf32>
      %c0_64 = arith.constant 0 : index
      %c0_65 = arith.constant 0 : index
      %113 = vector.load %arg5[%c0_64, %c0_65] : memref<8x1xf32, #tpu.memory_space<vmem>>, vector<8x1xf32>
      tpu.vector_store %arg5[%c0_64, %c0_65], %112 {strides = array<i32>} : memref<8x1xf32, #tpu.memory_space<vmem>>, vector<8x1xf32>,
    } else {
    }
    %c0_51 = arith.constant 0 : index
    %c0_52 = arith.constant 0 : index
    %99 = vector.load %arg4[%c0_51, %c0_52] : memref<8x1xf32, #tpu.memory_space<vmem>>, vector<8x1xf32>
    %cst = arith.constant dense<0.000000e+00> : vector<8xf32>
    %100 = vector.multi_reduction <add>, %94, %cst [1] : vector<8x128xf32> to vector<8xf32>
    %101 = vector.shape_cast %100 : vector<8xf32> to vector<8x1xf32>
    %102 = arith.addf %99, %101 : vector<8x1xf32>
    %c0_53 = arith.constant 0 : index
    %c0_54 = arith.constant 0 : index
    %103 = vector.load %arg4[%c0_53, %c0_54] : memref<8x1xf32, #tpu.memory_space<vmem>>, vector<8x1xf32>
    tpu.vector_store %arg4[%c0_53, %c0_54], %102 {strides = array<i32>} : memref<8x1xf32, #tpu.memory_space<vmem>>, vector<8x1xf32>,
    %c0_55 = arith.constant 0 : index
    %c0_56 = arith.constant 0 : index
    %104 = vector.load %arg5[%c0_55, %c0_56] : memref<8x1xf32, #tpu.memory_space<vmem>>, vector<8x1xf32>
    %105 = arith.mulf %94, %94 : vector<8x128xf32>
    %cst_57 = arith.constant dense<0.000000e+00> : vector<8xf32>
    %106 = vector.multi_reduction <add>, %105, %cst_57 [1] : vector<8x128xf32> to vector<8xf32>
    %107 = vector.shape_cast %106 : vector<8xf32> to vector<8x1xf32>
    %108 = arith.addf %104, %107 : vector<8x1xf32>
    %c0_58 = arith.constant 0 : index
    %c0_59 = arith.constant 0 : index
    %109 = vector.load %arg5[%c0_58, %c0_59] : memref<8x1xf32, #tpu.memory_space<vmem>>, vector<8x1xf32>
    tpu.vector_store %arg5[%c0_58, %c0_59], %108 {strides = array<i32>} : memref<8x1xf32, #tpu.memory_space<vmem>>, vector<8x1xf32>,
    return
  }
  func.func @transform_0(%arg0: i32) -> (i32, i32) {
    %c0_i32 = arith.constant 0 : i32
    %c0_i32_0 = arith.constant 0 : i32
    return %c0_i32, %arg0 : i32, i32
  }
  func.func @transform_1(%arg0: i32) -> (i32, i32) {
    %c0_i32 = arith.constant 0 : i32
    %c0_i32_0 = arith.constant 0 : i32
    %c0_i32_1 = arith.constant 0 : i32
    return %c0_i32, %c0_i32_0 : i32, i32
  }
  func.func @transform_2(%arg0: i32) -> (i32, i32) {
    %c0_i32 = arith.constant 0 : i32
    %c0_i32_0 = arith.constant 0 : i32
    return %c0_i32, %arg0 : i32, i32
  }
  func.func @transform_3(%arg0: i32) -> (i32, i32) {
    %c0_i32 = arith.constant 0 : i32
    %c0_i32_0 = arith.constant 0 : i32
    %c0_i32_1 = arith.constant 0 : i32
    return %c0_i32, %c0_i32_0 : i32, i32
  }
  func.func @transform_4(%arg0: i32) -> (i32, i32) {
    %c0_i32 = arith.constant 0 : i32
    %c0_i32_0 = arith.constant 0 : i32
    %c0_i32_1 = arith.constant 0 : i32
    return %c0_i32, %c0_i32_0 : i32, i32
  }
}

</mosaic_0001>

<bundles_post_ra>
// kernel: tpu_custom_call.1
= control target key start
LH: loop header
LB: loop body
LE: loop exit
PB: predicated region body
PF: predicated region fallthrough
CT: control target
= control target key end

     0   :  { %10 = vsyncpa [#allocation3], 0  ;;  %s340_s0 = inlined_call_operand.hbm [shape: f32[16,128], index: 0, kind: input, shape index: {}]   ;;  %s341_s1 = inlined_call_operand.vmem [shape: f32[8,4], index: 1, kind: input, shape index: {}]   ;;  %s342_s2 = inlined_call_operand.hbm [shape: f32[8,128], index: 2, kind: output, shape index: {0}]   ;;  %s343_s3 = inlined_call_operand.vmem [shape: f32[8,1], index: 3, kind: output, shape index: {1}]   ;;  %s344_s4 = inlined_call_operand.vmem [shape: f32[8,1], index: 4, kind: output, shape index: {2}]  }
   0x1   :  { %11 = vsyncpa [#allocation4], 0  ;;  %s275_s15 = smov [#allocation2]  }
   0x2   :  { %s17_s16 = sshll.u32 %s275_s15, 4  ;;  %s18_s16 = int_to_ptr.vmem [resolvable:$true] %s17_s16 }
   0x3   :  { %s239_s17 = scalar_lea.vmem %s18_s16, 256  ;;  %p244_p1 = scmp.lt.s32.totalorder %s18_s16, %s18_s16 }
   0x4   :  { %p240_p0 = scmp.ne.s32.totalorder %s18_s16, %s239_s17  ;;  %p245_p2 = scmp.lt.s32.totalorder %s239_s17, %s239_s17 }
   0x6   :  { %p246_p3 = por %p245_p2, %p244_p1 }
   0x8   :  { %p247_p4 = pnand %p246_p3, %p240_p0 }
   0xa   :  { %250 = shalt.err (!%p247_p4)
}
   0xb   :  { %s276_s18 = smov 128   ;;  %s277_s19 = smov 8  }
   0xc   :  { %23 = dma.hbm_to_vmem [thread:$0]  %s340_s0, 256, %s18_s16, [#allocation3], %s276_s18, %s276_s18, %s277_s19  }
   0xd   :  { %271 = dma.done.wait [#allocation3], 256  }
   0xe   :  { %272 = vsyncadd [#allocation3], 4294967040  ;;  %v278_v0 = vmov 0   ;;  %v279_v1 = vmov 2   ;;  %v29_v2 = vld [vmem:[%s341_s1] sm:$0xff]  ;;  %v280_v3 = vmov 1  }
   0xf   :  { %226 = vset.pattern.permute.xlu0 %v278_v0  ;;  %228 = vset.pattern.permute.xlu1 %v279_v1  ;;  %v281_v4 = vmov 3   ;;  %vm163_vm0 = vcmask 7168   ;;  %v282_v5 = vmov 0.0   ;;  %v201_v6 = vld [vmem:[#allocation2] ss:$0 sm:$0xff]  ;;  %s283_s1 = smov [#allocation5]  }
  0x10   :  { %33 = vperm.xlu0 %226, %v29_v2   ;;  %54 = vperm.xlu1 %228, %v29_v2   ;;  %164 = vst.msk [vmem:[%s343_s3] sm:$0xff] %vm163_vm0, %v282_v5  ;;  %165 = vst.msk [vmem:[%s344_s4] sm:$0xff] %vm163_vm0, %v282_v5  ;;  %v205_v7 = vld [vmem:[#allocation2 + $0x4] ss:$0 sm:$0xff]  ;;  %v209_v8 = vld [vmem:[#allocation2 + $0x8] ss:$0 sm:$0xff] }
  0x11   :  { %v213_v9 = vld [vmem:[#allocation2 + $0xc] ss:$0 sm:$0xff]  ;;  %v203_v12 = vld [vmem:[#allocation2 + $0x2] ss:$0 sm:$0xff]  ;;  %v207_v13 = vld [vmem:[#allocation2 + $0x6] ss:$0 sm:$0xff] }
  0x12   :  { %v211_v14 = vld [vmem:[#allocation2 + $0xa] ss:$0 sm:$0xff]  ;;  %v215_v15 = vld [vmem:[#allocation2 + $0xe] ss:$0 sm:$0xff]  ;;  %v202_v16 = vld [vmem:[#allocation2 + $0x1] ss:$0 sm:$0xff] }
  0x13   :  { %v206_v17 = vld [vmem:[#allocation2 + $0x5] ss:$0 sm:$0xff]  ;;  %v210_v18 = vld [vmem:[#allocation2 + $0x9] ss:$0 sm:$0xff]  ;;  %v214_v19 = vld [vmem:[#allocation2 + $0xd] ss:$0 sm:$0xff] }
  0x14   :  { %227 = vset.pattern.permute.xlu0 %v280_v3  ;;  %229 = vset.pattern.permute.xlu1 %v281_v4  ;;  %v204_v20 = vld [vmem:[#allocation2 + $0x3] ss:$0 sm:$0xff]  ;;  %v208_v25 = vld [vmem:[#allocation2 + $0x7] ss:$0 sm:$0xff]  ;;  %v212_v26 = vld [vmem:[#allocation2 + $0xb] ss:$0 sm:$0xff] }
  0x15   :  { %43 = vperm.xlu0 %227, %v29_v2   ;;  %65 = vperm.xlu1 %229, %v29_v2   ;;  %v216_v27 = vld [vmem:[#allocation2 + $0xf] ss:$0 sm:$0xff]  ;;  %s184_s27 = sshll.u32 %s283_s1, 4  ;;  %s185_s27 = int_to_ptr.vmem [resolvable:$true] %s184_s27 }
  0x16   :  { %s251_s28 = scalar_lea.vmem %s185_s27, 128  ;;  %p256_p6 = scmp.lt.s32.totalorder %s185_s27, %s185_s27 }
  0x17   :  { %p252_p5 = scmp.ne.s32.totalorder %s185_s27, %s251_s28  ;;  %p257_p7 = scmp.lt.s32.totalorder %s251_s28, %s251_s28 }
  0x19   :  { %230 = vset.pattern.permute.xlu0 %v281_v4  ;;  %p258_p8 = por %p257_p7, %p256_p6 }
  0x1b   :  { %p259_p9 = pnand %p258_p8, %p252_p5 }
  0x8b   :  { %v34_v10 = vpop.permute.xlu0 %33  ;;  %v55_v11 = vpop.permute.xlu1 %54 }
  0x8c   :  { %v40_v21 = vmul.f32 %v201_v6, %v34_v10  ;;  %v79_v22 = vmul.f32 %v205_v7, %v34_v10  ;;  %v107_v23 = vmul.f32 %v209_v8, %v34_v10  ;;  %v134_v24 = vmul.f32 %v213_v9, %v34_v10 }
  0x8d   :  { %v61_v28 = vmul.f32 %v203_v12, %v55_v11  ;;  %v92_v29 = vmul.f32 %v207_v13, %v55_v11  ;;  %v120_v30 = vmul.f32 %v211_v14, %v55_v11  ;;  %v147_v31 = vmul.f32 %v215_v15, %v55_v11 }
  0x90   :  { %v44_v32 = vpop.permute.xlu0 %43  ;;  %v66_v33 = vpop.permute.xlu1 %65 }
  0x91   :  { %v50_v34 = vmul.f32 %v202_v16, %v44_v32  ;;  %v85_v35 = vmul.f32 %v206_v17, %v44_v32  ;;  %v113_v36 = vmul.f32 %v210_v18, %v44_v32  ;;  %v140_v37 = vmul.f32 %v214_v19, %v44_v32 }
  0x92   :  { %v72_v38 = vmul.f32 %v204_v20, %v66_v33  ;;  %v99_v39 = vmul.f32 %v208_v25, %v66_v33  ;;  %v127_v40 = vmul.f32 %v212_v26, %v66_v33  ;;  %v154_v41 = vmul.f32 %v216_v27, %v66_v33 }
  0x93   :  { %v51_v42 = vadd.f32 %v50_v34, %v40_v21  ;;  %v86_v43 = vadd.f32 %v85_v35, %v79_v22  ;;  %v114_v44 = vadd.f32 %v113_v36, %v107_v23  ;;  %v141_v45 = vadd.f32 %v140_v37, %v134_v24 }
  0x95   :  { %v62_v46 = vadd.f32 %v61_v28, %v51_v42  ;;  %v93_v47 = vadd.f32 %v92_v29, %v86_v43  ;;  %v121_v48 = vadd.f32 %v120_v30, %v114_v44  ;;  %v148_v49 = vadd.f32 %v147_v31, %v141_v45 }
  0x97   :  { %v73_v50 = vadd.f32 %v72_v38, %v62_v46  ;;  %v100_v51 = vadd.f32 %v99_v39, %v93_v47  ;;  %v128_v52 = vadd.f32 %v127_v40, %v121_v48  ;;  %v155_v53 = vadd.f32 %v154_v41, %v148_v49 }
  0x99   :  { %v101_v54 = vmax.f32 %v73_v50, %v100_v51  ;;  %v156_v55 = vmax.f32 %v128_v52, %v155_v53 }
  0x9b   :  { %v157_v56 = vmax.f32 %v101_v54, %v156_v55 }
  0x9d   :  { %167 = vadd.xlane.f32.xlu1 %v157_v56  ;;  %158 = vst [vmem:[#allocation5] sm:$0xff] %v157_v56  ;;  %v173_v57 = vmul.f32 %v157_v56, %v157_v56 }
  0x9f   :  { %174 = vadd.xlane.f32.xlu0 %v173_v57 }
  0xa0   :  { %262 = shalt.err (!%p259_p9)
}
  0xa1   :  { %187 = dma.vmem_to_hbm [thread:$0]  %s185_s27, 128, %s342_s2, [#allocation4]   ;;  %v166_v58 = vld [vmem:[%s343_s3] sm:$0xff] }
  0xa2   :  { %v172_v60 = vld [vmem:[%s344_s4] sm:$0xff] }
 0x126   :  { %v168_v59 = vpop.xlane.xlu1 %167 }
 0x127   :  { %v169_v61 = vadd.f32 %v168_v59, %v166_v58 }
 0x128   :  { %v175_v62 = vpop.xlane.xlu0 %174 }
 0x129   :  { %171 = vst.msk [vmem:[%s343_s3] sm:$0xff] %vm163_vm0, %v169_v61  ;;  %v176_v63 = vadd.f32 %v175_v62, %v172_v60 }
 0x12b   :  { %177 = vst.msk [vmem:[%s344_s4] sm:$0xff] %vm163_vm0, %v176_v63 }
 0x12c   :  { %273 = dma.done.wait [#allocation4], 128  }
 0x12d   :  { %274 = vsyncadd [#allocation4], 4294967168 }
 0x12e   :  { %199 = vsyncpa [#allocation3], 1 }
 0x12f   :  { %200 = vsyncpa [#allocation4], 1 }

</bundles_post_ra>
